<compile_context>
chip_gen: v7x
topology: tpu7x:2x2x1
jax: 0.10.0
libtpu: 0.0.40
codegen_flags: <defaults>
</compile_context>

<pallas_src>
import numpy as np
import jax
import jax.numpy as jnp
from jax.experimental import pallas as pl
from jax.experimental.pallas import tpu as pltpu

# ---------------- static graph configuration (plays the role of mat_wann) ------------
IN_DIM = 6
NUM_HIDDEN = 4
OUT_DIM = 3
TOTAL_COLS = IN_DIM + NUM_HIDDEN           # sources: inputs + hidden nodes
NUM_ROWS = NUM_HIDDEN + OUT_DIM            # nodes to compute: hidden + output
CONSTANT_WEIGHT = 0.5
BATCH = 8

# Activation codes: 1 = identity, 2 = tanh, 3 = relu, 4 = sigmoid
# Hidden rows only reference inputs and previously computed hidden nodes.
MAT = np.array(
    [
        # in0 in1 in2 in3 in4 in5 | h0 h1 h2 h3
        [2, 0, 0, 1, 0, 0,  0, 0, 0, 0],   # hidden_0
        [0, 3, 0, 0, 4, 0,  1, 0, 0, 0],   # hidden_1
        [0, 0, 1, 0, 0, 0,  0, 2, 0, 0],   # hidden_2
        [0, 0, 0, 0, 0, 2,  3, 0, 4, 0],   # hidden_3
        [1, 0, 0, 0, 0, 0,  0, 0, 0, 2],   # output_0
        [0, 0, 0, 0, 0, 0,  0, 3, 1, 0],   # output_1
        [0, 0, 0, 0, 4, 0,  0, 0, 0, 1],   # output_2
    ],
    dtype=np.int32,
)
assert MAT.shape == (NUM_ROWS, TOTAL_COLS)

# Guard: hidden rows must only reference already-computed hidden nodes
# (strict lower triangularity of the hidden block), otherwise the baked graph
# would silently differ from the torch module.
for _i in range(NUM_ROWS):
    for _j in range(IN_DIM, TOTAL_COLS):
        if MAT[_i, _j] != 0:
            assert (_j - IN_DIM) < min(_i, NUM_HIDDEN), "MAT is not topologically ordered"

_ACT_FNS = {
    1: lambda v: v,
    2: jnp.tanh,
    3: lambda v: jnp.maximum(v, 0.0),
    4: jax.nn.sigmoid,
}


# --------------------------------- Pallas kernel --------------------------------------
def sparse_wann_kernel(w_ref, x_ref, vals_ref, out_ref):
    """Computes all node values and activated outputs of the sparse WANN graph.

    w_ref    : (1,)               float32 SMEM — shared constant connection weight
    x_ref    : (BATCH, IN_DIM)    float32 VMEM — raw inputs
    vals_ref : (BATCH, NUM_ROWS)  float32 VMEM — node values (pre output activation)
    out_ref  : (BATCH, OUT_DIM)   float32 VMEM — tanh(output node values)
    """
    w = w_ref[0]
    v_in = x_ref[...] * w                                  # (B, IN_DIM), hoisted

    # Hoisted activation tables for the input columns: only types actually used
    # by some input-column connection are computed (static decision from MAT).
    input_types = sorted({int(t) for t in np.unique(MAT[:, :IN_DIM]) if t != 0})
    act_in = {t: _ACT_FNS[t](v_in) for t in input_types}   # each (B, IN_DIM)

    hidden_vals = []        # raw hidden node values, (B, 1) each (register-resident)
    hidden_act = {}         # (hidden_idx, type) -> activated (B, 1), memoized
    node_cols = []          # all node values, (B, 1) each

    # Graph structure is static -> fully unrolled; only the hidden-node chain is
    # serially dependent, and each step adds just one scalar-width activation.
    for i in range(NUM_ROWS):
        terms = []
        for j in range(TOTAL_COLS):
            t = int(MAT[i, j])
            if t == 0:
                continue
            if j < IN_DIM:
                terms.append(act_in[t][:, j:j + 1])        # precomputed, off-chain
            else:
                h = j - IN_DIM
                key = (h, t)
                if key not in hidden_act:
                    hidden_act[key] = _ACT_FNS[t](w * hidden_vals[h])
                terms.append(hidden_act[key])
        if terms:
            val = terms[0]
            for term in terms[1:]:
                val = val + term
        else:
            # Row with no connections contributes a zero node (matches torch module).
            val = jnp.zeros((x_ref.shape[0], 1), jnp.float32)
        node_cols.append(val)
        if i < NUM_HIDDEN:
            hidden_vals.append(val)

    vals = jnp.concatenate(node_cols, axis=1)              # (B, NUM_ROWS), in vregs
    vals_ref[...] = vals                                   # single lane-dense store
    out_ref[...] = jnp.tanh(vals[:, NUM_HIDDEN:])          # fused output activation


def sparse_model_forward(x, weight):
    """x: (B, IN_DIM) float32. Returns (outputs, nodes) like SparseModel.forward."""
    b = x.shape[0]
    # TODO(synk): for large batches on v7x, add a batch grid axis with
    # dimension_semantics=("parallel",) (tile >= 256 rows) so both TensorCores
    # are used; at B=8 a single grid step is optimal.
    node_vals, outputs = pl.pallas_call(
        sparse_wann_kernel,
        out_shape=(
            jax.ShapeDtypeStruct((b, NUM_ROWS), jnp.float32),
            jax.ShapeDtypeStruct((b, OUT_DIM), jnp.float32),
        ),
        in_specs=[
            pl.BlockSpec(memory_space=pltpu.MemorySpace.SMEM),   # weight scalar
            pl.BlockSpec(memory_space=pltpu.MemorySpace.VMEM),   # x
        ],
        out_specs=(
            pl.BlockSpec(memory_space=pltpu.MemorySpace.VMEM),
            pl.BlockSpec(memory_space=pltpu.MemorySpace.VMEM),
        ),
    )(weight, x)

    nodes = {f"hidden_{i}": node_vals[:, i:i + 1] for i in range(NUM_HIDDEN)}
    nodes.update({
        f"output_{i}": node_vals[:, NUM_HIDDEN + i:NUM_HIDDEN + i + 1]
        for i in range(OUT_DIM)
    })
    return outputs, nodes


# ------------------------------ pure-numpy reference -----------------------------------
def reference_forward(x, mat, weight):
    acts = {
        1: lambda v: v,
        2: np.tanh,
        3: lambda v: np.maximum(v, 0.0),
        4: lambda v: 1.0 / (1.0 + np.exp(-v)),
    }
    b = x.shape[0]
    src = np.zeros((b, TOTAL_COLS), np.float64)
    src[:, :IN_DIM] = x
    vals = np.zeros((b, NUM_ROWS), np.float64)
    for i in range(NUM_ROWS):
        acc = np.zeros(b, np.float64)
        for j in range(TOTAL_COLS):
            t = int(mat[i, j])
            if t != 0:
                acc = acc + acts[t](weight * src[:, j])
        vals[:, i] = acc
        if i < NUM_HIDDEN:
            src[:, IN_DIM + i] = acc
    return np.tanh(vals[:, NUM_HIDDEN:]), vals


if __name__ == "__main__":
    key = jax.random.PRNGKey(0)
    x = jax.random.normal(key, (BATCH, IN_DIM), dtype=jnp.float32)
    weight = jnp.array([CONSTANT_WEIGHT], dtype=jnp.float32)

    outputs, nodes = sparse_model_forward(x, weight)
    outputs = jax.block_until_ready(outputs)

    ref_out, ref_vals = reference_forward(np.asarray(x, np.float64), MAT, CONSTANT_WEIGHT)
    np.testing.assert_allclose(np.asarray(outputs), ref_out, rtol=1e-5, atol=1e-5)
    for i in range(NUM_HIDDEN):
        np.testing.assert_allclose(
            np.asarray(nodes[f"hidden_{i}"])[:, 0], ref_vals[:, i], rtol=1e-5, atol=1e-5)
    for i in range(OUT_DIM):
        np.testing.assert_allclose(
            np.asarray(nodes[f"output_{i}"])[:, 0], ref_vals[:, NUM_HIDDEN + i],
            rtol=1e-5, atol=1e-5)

    print("KERNEL_OK")
</pallas_src>

<mosaic_0001>
module attributes {stable_mosaic.version = 11 : i64} {
  func.func @sparse_wann_kernel(%arg0: memref<1xf32, #tpu.memory_space<smem>>, %arg1: memref<8x6xf32, #tpu.memory_space<vmem>>, %arg2: memref<8x7xf32, #tpu.memory_space<vmem>>, %arg3: memref<8x3xf32, #tpu.memory_space<vmem>>) attributes {dimension_semantics = [], scalar_prefetch = 0 : i64, scratch_operands = 0 : i64, tpu.core_type = #tpu.core_type<tc>} {
    %c0 = arith.constant 0 : index
    %0 = memref.load %arg0[%c0] : memref<1xf32, #tpu.memory_space<smem>>
    %c0_0 = arith.constant 0 : index
    %c0_1 = arith.constant 0 : index
    %1 = vector.load %arg1[%c0_0, %c0_1] : memref<8x6xf32, #tpu.memory_space<vmem>>, vector<8x6xf32>
    %2 = vector.broadcast %0 : f32 to vector<8x6xf32>
    %3 = arith.mulf %1, %2 : vector<8x6xf32>
    %4 = math.tanh %3 : vector<8x6xf32>
    %cst = arith.constant 0.000000e+00 : f32
    %5 = vector.broadcast %cst : f32 to vector<8x6xf32>
    %6 = arith.maximumf %3, %5 : vector<8x6xf32>
    %7 = arith.negf %3 : vector<8x6xf32>
    %8 = math.exp %7 : vector<8x6xf32>
    %cst_2 = arith.constant 1.000000e+00 : f32
    %9 = vector.broadcast %cst_2 : f32 to vector<8x6xf32>
    %10 = arith.addf %9, %8 : vector<8x6xf32>
    %11 = arith.divf %9, %10 : vector<8x6xf32>
    %12 = vector.extract_strided_slice %4 {offsets = [0, 0], sizes = [8, 1], strides = [1, 1]} : vector<8x6xf32> to vector<8x1xf32>
    %13 = vector.extract_strided_slice %3 {offsets = [0, 3], sizes = [8, 1], strides = [1, 1]} : vector<8x6xf32> to vector<8x1xf32>
    %14 = arith.addf %12, %13 : vector<8x1xf32>
    %15 = vector.extract_strided_slice %6 {offsets = [0, 1], sizes = [8, 1], strides = [1, 1]} : vector<8x6xf32> to vector<8x1xf32>
    %16 = vector.extract_strided_slice %11 {offsets = [0, 4], sizes = [8, 1], strides = [1, 1]} : vector<8x6xf32> to vector<8x1xf32>
    %17 = vector.broadcast %0 : f32 to vector<8x1xf32>
    %18 = arith.mulf %17, %14 : vector<8x1xf32>
    %19 = arith.addf %15, %16 : vector<8x1xf32>
    %20 = arith.addf %19, %18 : vector<8x1xf32>
    %21 = vector.extract_strided_slice %3 {offsets = [0, 2], sizes = [8, 1], strides = [1, 1]} : vector<8x6xf32> to vector<8x1xf32>
    %22 = vector.broadcast %0 : f32 to vector<8x1xf32>
    %23 = arith.mulf %22, %20 : vector<8x1xf32>
    %24 = math.tanh %23 : vector<8x1xf32>
    %25 = arith.addf %21, %24 : vector<8x1xf32>
    %26 = vector.extract_strided_slice %4 {offsets = [0, 5], sizes = [8, 1], strides = [1, 1]} : vector<8x6xf32> to vector<8x1xf32>
    %27 = vector.broadcast %0 : f32 to vector<8x1xf32>
    %28 = arith.mulf %27, %14 : vector<8x1xf32>
    %cst_3 = arith.constant 0.000000e+00 : f32
    %29 = vector.broadcast %cst_3 : f32 to vector<8x1xf32>
    %30 = arith.maximumf %28, %29 : vector<8x1xf32>
    %31 = vector.broadcast %0 : f32 to vector<8x1xf32>
    %32 = arith.mulf %31, %25 : vector<8x1xf32>
    %33 = arith.negf %32 : vector<8x1xf32>
    %34 = math.exp %33 : vector<8x1xf32>
    %cst_4 = arith.constant 1.000000e+00 : f32
    %35 = vector.broadcast %cst_4 : f32 to vector<8x1xf32>
    %36 = arith.addf %35, %34 : vector<8x1xf32>
    %37 = arith.divf %35, %36 : vector<8x1xf32>
    %38 = arith.addf %26, %30 : vector<8x1xf32>
    %39 = arith.addf %38, %37 : vector<8x1xf32>
    %40 = vector.extract_strided_slice %3 {offsets = [0, 0], sizes = [8, 1], strides = [1, 1]} : vector<8x6xf32> to vector<8x1xf32>
    %41 = vector.broadcast %0 : f32 to vector<8x1xf32>
    %42 = arith.mulf %41, %39 : vector<8x1xf32>
    %43 = math.tanh %42 : vector<8x1xf32>
    %44 = arith.addf %40, %43 : vector<8x1xf32>
    %45 = vector.broadcast %0 : f32 to vector<8x1xf32>
    %46 = arith.mulf %45, %20 : vector<8x1xf32>
    %cst_5 = arith.constant 0.000000e+00 : f32
    %47 = vector.broadcast %cst_5 : f32 to vector<8x1xf32>
    %48 = arith.maximumf %46, %47 : vector<8x1xf32>
    %49 = vector.broadcast %0 : f32 to vector<8x1xf32>
    %50 = arith.mulf %49, %25 : vector<8x1xf32>
    %51 = arith.addf %48, %50 : vector<8x1xf32>
    %52 = vector.extract_strided_slice %11 {offsets = [0, 4], sizes = [8, 1], strides = [1, 1]} : vector<8x6xf32> to vector<8x1xf32>
    %53 = vector.broadcast %0 : f32 to vector<8x1xf32>
    %54 = arith.mulf %53, %39 : vector<8x1xf32>
    %55 = arith.addf %52, %54 : vector<8x1xf32>
    %56 = tpu.concatenate %14, %20, %25, %39, %44, %51, %55 in 1 : vector<8x1xf32>, vector<8x1xf32>, vector<8x1xf32>, vector<8x1xf32>, vector<8x1xf32>, vector<8x1xf32>, vector<8x1xf32> -> vector<8x7xf32>
    %c0_6 = arith.constant 0 : index
    %c0_7 = arith.constant 0 : index
    %57 = vector.load %arg2[%c0_6, %c0_7] : memref<8x7xf32, #tpu.memory_space<vmem>>, vector<8x7xf32>
    tpu.vector_store %arg2[%c0_6, %c0_7], %56 {strides = array<i32>} : memref<8x7xf32, #tpu.memory_space<vmem>>, vector<8x7xf32>,
    %58 = vector.extract_strided_slice %56 {offsets = [0, 4], sizes = [8, 3], strides = [1, 1]} : vector<8x7xf32> to vector<8x3xf32>
    %59 = math.tanh %58 : vector<8x3xf32>
    %c0_8 = arith.constant 0 : index
    %c0_9 = arith.constant 0 : index
    %60 = vector.load %arg3[%c0_8, %c0_9] : memref<8x3xf32, #tpu.memory_space<vmem>>, vector<8x3xf32>
    tpu.vector_store %arg3[%c0_8, %c0_9], %59 {strides = array<i32>} : memref<8x3xf32, #tpu.memory_space<vmem>>, vector<8x3xf32>,
    return
  }
}

</mosaic_0001>

<bundles_post_ra>
// kernel: tpu_custom_call.1
= control target key start
LH: loop header
LB: loop body
LE: loop exit
PB: predicated region body
PF: predicated region fallthrough
CT: control target
= control target key end

     0   :  { %10 = vsyncpa [#allocation4], 0  ;;  %s303_s0 = inlined_call_operand.<no memory space> [shape: f32[1], index: 0, kind: input, shape index: {}]   ;;  %s304_s1 = inlined_call_operand.hbm [shape: f32[8,6], index: 1, kind: input, shape index: {}]   ;;  %s305_s2 = inlined_call_operand.hbm [shape: f32[8,7], index: 2, kind: output, shape index: {0}]   ;;  %s306_s3 = inlined_call_operand.vmem [shape: f32[8,3], index: 3, kind: output, shape index: {1}]  }
   0x1   :  { %11 = vsyncpa [#allocation5], 0  ;;  %s231_s12 = smov [#allocation3]   ;;  %s183_s16 = scalar_lea.hbm %s304_s1, 128 }
   0x2   :  { %s20_s13 = sshll.u32 %s231_s12, 4  ;;  %p184_p0 = scmp.ne.s32.totalorder %s304_s1, %s183_s16  ;;  %s21_s13 = int_to_ptr.vmem [resolvable:$true] %s20_s13 }
   0x3   :  { %p187_p1 = scmp.lt.u32.totalorder %s183_s16, %s304_s1 }
   0x5   :  { %p189_p2 = pnand %p187_p1, %p184_p0 }
   0x7   :  { %192 = shalt.err (!%p189_p2)
}
   0x8   :  { %s193_s21 = scalar_lea.vmem %s21_s13, 128  ;;  %p198_p4 = scmp.lt.s32.totalorder %s21_s13, %s21_s13 }
   0x9   :  { %p194_p3 = scmp.ne.s32.totalorder %s21_s13, %s193_s21  ;;  %p199_p5 = scmp.lt.s32.totalorder %s193_s21, %s193_s21 }
   0xb   :  { %p200_p6 = por %p199_p5, %p198_p4 }
   0xd   :  { %p201_p7 = pnand %p200_p6, %p194_p3 }
   0xf   :  { %204 = shalt.err (!%p201_p7)
}
  0x10   :  { %23 = dma.hbm_to_vmem [thread:$0]  %s304_s1, 128, %s21_s13, [#allocation4]  }
  0x11   :  { %227 = dma.done.wait [#allocation4], 128  }
  0x12   :  { %228 = vsyncadd [#allocation4], 4294967168  ;;  %v29_v0 = vstv %s303_s0  ;;  %v28_v1 = vld [vmem:[#allocation3] sm:$0xff]  ;;  %s232_s26 = smov 125   ;;  %s233_s0 = smov 1   ;;  %vm114_vm0 = vcmask 7168  }
  0x13   :  { %v278_v2 = vmul.f32 %v29_v0, %v28_v1  ;;  %s234_s1 = smov 5   ;;  %vm116_vm1 = vcmask 15360   ;;  %s235_s27 = smov 3   ;;  %vm118_vm2 = vcmask 23552   ;;  %vm120_vm3 = vcmask 31744  }
  0x14   :  { %s236_s28 = smov 127   ;;  %s237_s29 = smov 126   ;;  %vm122_vm4 = vcmask 39936   ;;  %vm124_vm5 = vcmask 48128   ;;  %vm126_vm6 = vcmask 56320  }
  0x15   :  { %40 = vrot.lane.b32.xlu0 %v278_v2, %s232_s26  ;;  %v153_v3 = vmul.f32 -1.442695, %v278_v2  ;;  %v32_v12 = vmax.f32 %v278_v2, 0.0  ;;  %s238_s30 = smov 4   ;;  %s239_s4 = smov 123  }
  0x16   :  { %s240_s5 = smov 2   ;;  %s241_s6 = smov [#allocation6]  }
  0x17   :  { %167 = vpow2.f32 %v153_v3  ;;  %s140_s7 = sshll.u32 %s241_s6, 4  ;;  %s141_s7 = int_to_ptr.vmem [resolvable:$true] %s140_s7 }
  0x18   :  { %s205_s8 = scalar_lea.vmem %s141_s7, 128  ;;  %p210_p9 = scmp.lt.s32.totalorder %s141_s7, %s141_s7 }
  0x19   :  { %p206_p8 = scmp.ne.s32.totalorder %s141_s7, %s205_s8  ;;  %p211_p10 = scmp.lt.s32.totalorder %s205_s8, %s205_s8 }
  0x1b   :  { %p212_p11 = por %p211_p10, %p210_p9 }
  0x1d   :  { %p213_p12 = pnand %p212_p11, %p206_p8 }
  0x21   :  { %v168_v4 = vpop.eup %167 }
  0x22   :  { %v36_v5 = vadd.f32 1.0, %v168_v4 }
  0x24   :  { %169 = vrcp.f32 %v36_v5 }
  0x25   :  { %171 = vtanh.f32 %v278_v2 }
  0x2e   :  { %v170_v6 = vpop.eup %169 }
  0x2f   :  { %46 = vrot.lane.b32.xlu0 %v170_v6, %s232_s26  ;;  %v172_v7 = vpop.eup %171 }
  0x87   :  { %v41_v8 = vpop.permute.xlu0 %40 }
  0x88   :  { %v43_v9 = vadd.f32 %v172_v7, %v41_v8 }
  0x8a   :  { %v44_v10 = vmul.f32 %v43_v9, %v29_v0 }
  0x8c   :  { %51 = vrot.lane.b32.xlu1 %v44_v10, %s233_s0  ;;  %v62_v11 = vmax.f32 %v44_v10, 0.0 }
  0x8e   :  { %71 = vrot.lane.b32.xlu0 %v62_v11, %s234_s1 }
  0xa1   :  { %v47_v13 = vpop.permute.xlu0 %46 }
  0xa2   :  { %v49_v14 = vadd.f32 %v47_v13, %v32_v12 }
  0xfe   :  { %v52_v15 = vpop.permute.xlu1 %51 }
  0xff   :  { %v54_v16 = vadd.f32 %v52_v15, %v49_v14 }
 0x100   :  { %v72_v28 = vpop.permute.xlu0 %71 }
 0x101   :  { %v55_v17 = vmul.f32 %v54_v16, %v29_v0  ;;  %v115_v21 = vsel %vm114_vm0, %v43_v9, %v54_v16  ;;  %v74_v29 = vadd.f32 %v172_v7, %v72_v28 }
 0x103   :  { %173 = vtanh.f32 %v55_v17  ;;  %v87_v33 = vmax.f32 %v55_v17, 0.0 }
 0x10d   :  { %v174_v18 = vpop.eup %173 }
 0x10e   :  { %58 = vrot.lane.b32.xlu1 %v174_v18, %s233_s0 }
 0x180   :  { %v59_v19 = vpop.permute.xlu1 %58 }
 0x181   :  { %v61_v20 = vadd.f32 %v59_v19, %v278_v2 }
 0x183   :  { %v63_v22 = vmul.f32 %v61_v20, %v29_v0  ;;  %v117_v23 = vsel %vm116_vm1, %v115_v21, %v61_v20 }
 0x185   :  { %v154_v24 = vmul.f32 -1.442695, %v63_v22 }
 0x187   :  { %175 = vpow2.f32 %v154_v24 }
 0x191   :  { %v176_v25 = vpop.eup %175 }
 0x192   :  { %v67_v26 = vadd.f32 1.0, %v176_v25 }
 0x194   :  { %177 = vrcp.f32 %v67_v26 }
 0x19e   :  { %v178_v27 = vpop.eup %177 }
 0x19f   :  { %76 = vrot.lane.b32.xlu1 %v178_v27, %s235_s27 }
 0x1a3   :  { %89 = vrot.lane.b32.xlu1 %v63_v22, %s236_s28 }
 0x211   :  { %v77_v30 = vpop.permute.xlu1 %76 }
 0x212   :  { %v79_v31 = vadd.f32 %v77_v30, %v74_v29 }
 0x214   :  { %v80_v32 = vmul.f32 %v79_v31, %v29_v0  ;;  %99 = vrot.lane.b32.xlu1 %v79_v31, %s237_s29 }
 0x215   :  { %v90_v34 = vpop.permute.xlu1 %89 }
 0x216   :  { %179 = vtanh.f32 %v80_v32  ;;  %v92_v35 = vadd.f32 %v90_v34, %v87_v33 }
 0x218   :  { %107 = vrot.lane.b32.xlu1 %v92_v35, %s238_s30 }
 0x220   :  { %v180_v36 = vpop.eup %179 }
 0x221   :  { %83 = vrot.lane.b32.xlu0 %v180_v36, %s239_s4 }
 0x225   :  { %94 = vrot.lane.b32.xlu0 %v80_v32, %s236_s28 }
 0x286   :  { %v100_v41 = vpop.permute.xlu1 %99 }
 0x287   :  { %v119_v42 = vsel %vm118_vm2, %v117_v23, %v100_v41 }
 0x28a   :  { %v108_v45 = vpop.permute.xlu1 %107 }
 0x293   :  { %v84_v37 = vpop.permute.xlu0 %83 }
 0x294   :  { %v86_v38 = vadd.f32 %v84_v37, %v278_v2 }
 0x296   :  { %103 = vrot.lane.b32.xlu0 %v86_v38, %s238_s30 }
 0x297   :  { %v95_v39 = vpop.permute.xlu0 %94 }
 0x298   :  { %v97_v40 = vadd.f32 %v170_v6, %v95_v39 }
 0x29a   :  { %111 = vrot.lane.b32.xlu0 %v97_v40, %s240_s5 }
 0x308   :  { %v104_v43 = vpop.permute.xlu0 %103 }
 0x309   :  { %v121_v44 = vsel %vm120_vm3, %v119_v42, %v104_v43 }
 0x30a   :  { %v123_v46 = vsel %vm122_vm4, %v121_v44, %v108_v45 }
 0x30c   :  { %v112_v47 = vpop.permute.xlu0 %111 }
 0x30d   :  { %v125_v48 = vsel %vm124_vm5, %v123_v46, %v112_v47 }
 0x30e   :  { %181 = vtanh.f32 %v125_v48  ;;  %127 = vst.msk [vmem:[#allocation6] sm:$0xff] %vm126_vm6, %v125_v48 }
 0x30f   :  { %216 = shalt.err (!%p213_p12)
}
 0x310   :  { %s217_s11 = scalar_lea.hbm %s305_s2, 128 }
 0x311   :  { %p218_p13 = scmp.ne.s32.totalorder %s305_s2, %s217_s11  ;;  %p221_p0 = scmp.lt.u32.totalorder %s217_s11, %s305_s2 }
 0x313   :  { %p223_p1 = pnand %p221_p0, %p218_p13 }
 0x315   :  { %226 = shalt.err (!%p223_p1)
}
 0x316   :  { %143 = dma.vmem_to_hbm [thread:$0]  %s141_s7, 128, %s305_s2, [#allocation5]  }
 0x317   :  { %s242_s18 = smov 124  }
 0x318   :  { %v182_v49 = vpop.eup %181 }
 0x319   :  { %130 = vrot.lane.b32.xlu1 %v182_v49, %s242_s18 }
 0x38b   :  { %v131_v50 = vpop.permute.xlu1 %130 }
 0x38c   :  { %133 = vst.msk [vmem:[%s306_s3] sm:$0xff] %vm118_vm2, %v131_v50 }
 0x38d   :  { %229 = dma.done.wait [#allocation5], 128  }
 0x38e   :  { %230 = vsyncadd [#allocation5], 4294967168 }
 0x38f   :  { %151 = vsyncpa [#allocation4], 1 }
 0x390   :  { %152 = vsyncpa [#allocation5], 1 }

</bundles_post_ra>
